<compile_context>
chip_gen: v5e
topology: v5e:2x2
jax: 0.10.0
libtpu: 0.0.40
codegen_flags: <defaults>
</compile_context>

<pallas_src>
import jax
import jax.numpy as jnp
from jax.experimental import pallas as pl
from jax.experimental.pallas import tpu as pltpu

# ---------------- model config (small, consistent with the forward) ----------
B = 2                      # batch
C, H, W = 3, 16, 16        # NCHW image
PATCH = 4
P = (H // PATCH) * (W // PATCH)          # 16 patches per image
PD = C * PATCH * PATCH                   # 48  raw patch dim
DV = 64                                  # vision hidden dim
S = 8                                    # text sequence length
VOCAB = 64
DT = 48                                  # text embedding dim
E = 32                                   # shared projection (embed) dim
TEMPERATURE = 0.07                       # kept for parity; not used in forward

# padded layout dims (contractions padded only to a sublane multiple)
PDP = 64                                 # patch dim  48 -> 64   (K of matmul 1)
DVP = 64                                 # vision hidden, native 64
DTP = 64                                 # text embed 48 -> 64
EP = 128                                 # embed dim  32 -> 128  (lane-dense output)
OUT_ROWS = 8                             # one full (8,128) output slab
BP = B * P                               # 32 rows (multiple of 8 sublanes)


# ---------------- fused Pallas kernel -----------------------------------------
def _vlm_kernel(patches_ref, ids_ref, mask_ref,
                v_w1_ref, v_b1_ref, t_emb_ref,
                w_proj_ref, b_proj_ref,
                out_ref, stk_ref):
    # ---------------- vision encoder ----------------
    x = patches_ref[...]                                              # (B*P, 64)
    h = jnp.dot(x, v_w1_ref[...],
                preferred_element_type=jnp.float32) + v_b1_ref[...]    # (B*P, 64)
    # TODO(synk): PyTorch nn.GELU defaults to exact erf GELU; tanh approximation
    # kept here for guaranteed Mosaic lowering (tiny numeric difference).
    h = jax.nn.gelu(h)

    # mean-pool over patches: (B*P, DVP) -> (B, P, DVP) -> sublane reduce (XLU)
    pooled_v = jnp.sum(h.reshape(B, P, DVP), axis=1) * (1.0 / P)       # (B, 64)

    # ---------------- text encoder ----------------
    # weights[b, v] = sum_s mask[b, s] * (ids[b, s] == v)   (vectorized one-hot)
    ids = ids_ref[...]                                                 # (B, S) i32
    mask = mask_ref[...]                                               # (B, S) f32
    vocab_iota = jax.lax.broadcasted_iota(jnp.int32, (B, S, VOCAB), 2)
    weights = jnp.sum(
        jnp.where(ids[:, :, None] == vocab_iota, mask[:, :, None], 0.0),
        axis=1)                                                        # (B, VOCAB)

    # denominator directly from the attention mask; divide on the EUP slot
    denom = jnp.sum(mask, axis=1, keepdims=True) + 1e-6                # (B, 1)
    inv_denom = pl.reciprocal(denom, approx=True)
    # embedding gather == one-hot matmul against the VMEM-resident table
    pooled_t = jnp.dot(weights, t_emb_ref[...],
                       preferred_element_type=jnp.float32) * inv_denom  # (B, 64)

    # ---------------- fused projection + L2 norm ----------------
    # Block-diagonal stacked operand: rows 0:B -> [pooled_v | 0],
    #                                 rows B:2B -> [0 | pooled_t], rest zero.
    # w_proj rows 0:DVP hold the vision projection, rows DVP: hold the text one.
    stk_ref[...] = jnp.zeros_like(stk_ref)
    stk_ref[0:B, 0:DVP] = pooled_v
    stk_ref[B:2 * B, DVP:DVP + DTP] = pooled_t

    proj = jnp.dot(stk_ref[...], w_proj_ref[...],
                   preferred_element_type=jnp.float32) + b_proj_ref[...]  # (8,128)
    # padded weight/bias columns are exactly zero, so summing all 128 lanes
    # equals the true E=32 L2 norm; rsqrt runs on the EUP slot.
    norm = jax.lax.rsqrt(jnp.sum(proj * proj, axis=-1, keepdims=True) + 1e-12)
    out_ref[...] = (proj * norm).astype(out_ref.dtype)


# ---------------- wrappers ----------------------------------------------------
def _patchify_pad(images):
    """NCHW -> (B*P, PDP) zero-padded patch rows (conv-as-matmul layout)."""
    b, c, h, w = images.shape
    x = images.reshape(b, c, h // PATCH, PATCH, w // PATCH, PATCH)
    x = jnp.transpose(x, (0, 2, 4, 1, 3, 5))          # B, Hp, Wp, C, ph, pw
    x = x.reshape(b * P, PD).astype(jnp.float32)
    # fold the 48->64 pad into a single fused set (no separate pad op)
    return jnp.zeros((BP, PDP), jnp.float32).at[:, :PD].set(x)


def medical_vlm_forward(images, input_ids, attention_mask, params):
    """Mirrors MedicalVLM.forward: dict of L2-normalized (B, E) embeddings."""
    patches = _patchify_pad(images)                    # (B*P, 64)
    ids = input_ids.astype(jnp.int32)                  # (B, S)
    mask = attention_mask.astype(jnp.float32)          # (B, S)

    vmem = pl.BlockSpec(memory_space=pltpu.MemorySpace.VMEM)

    out_slab = pl.pallas_call(
        _vlm_kernel,
        out_shape=jax.ShapeDtypeStruct((OUT_ROWS, EP), jnp.float32),
        in_specs=[vmem] * 8,
        out_specs=vmem,
        scratch_shapes=[pltpu.VMEM((OUT_ROWS, DVP + DTP), jnp.float32)],
        # TODO(synk): at production batch sizes add a batch grid axis with
        # dimension_semantics=("parallel",) so v7x's two TensorCores split work.
    )(patches, ids, mask,
      params["v_w1"], params["v_b1"], params["t_embed"],
      params["w_proj"], params["b_proj"])

    # rows 0:B = image embeds, rows B:2B = text embeds; slice back to E=32
    return {"image_embeds": out_slab[0:B, :E],
            "text_embeds": out_slab[B:2 * B, :E]}


def _pad2(x, rows, cols):
    """Zero-pad a 2-D weight to (rows, cols) once at init."""
    out = jnp.zeros((rows, cols), x.dtype)
    return out.at[: x.shape[0], : x.shape[1]].set(x)


def init_params(key):
    ks = jax.random.split(key, 4)
    v_w1 = jax.random.normal(ks[0], (PD, DV), jnp.float32) * 0.02
    v_wp = jax.random.normal(ks[1], (DV, E), jnp.float32) * 0.02
    t_emb = jax.random.normal(ks[2], (VOCAB, DT), jnp.float32) * 0.02
    t_wp = jax.random.normal(ks[3], (DT, E), jnp.float32) * 0.02
    v_b1 = jnp.zeros((DV,), jnp.float32)
    v_bp = jnp.zeros((E,), jnp.float32)
    t_bp = jnp.zeros((E,), jnp.float32)

    # Fused block-stacked projection weight/bias built ONCE at init.
    # NOTE: padded regions MUST stay exactly zero — the in-kernel L2 norm sums
    # all 128 lanes and relies on the padded columns contributing nothing.
    w_proj = jnp.zeros((DVP + DTP, EP), jnp.float32)
    w_proj = w_proj.at[:DV, :E].set(v_wp)              # rows 0:64   vision proj
    w_proj = w_proj.at[DVP:DVP + DT, :E].set(t_wp)     # rows 64:112 text proj
    b_proj = jnp.zeros((OUT_ROWS, EP), jnp.float32)
    b_proj = b_proj.at[0:B, :E].set(v_bp)              # rows 0:B   image bias
    b_proj = b_proj.at[B:2 * B, :E].set(t_bp)          # rows B:2B  text bias

    return {
        "v_w1":    _pad2(v_w1, PDP, DVP),              # (64, 64) — K padded 48->64 only
        "v_b1":    _pad2(v_b1.reshape(1, DV), 1, DVP),  # (1, 64)
        "t_embed": _pad2(t_emb, VOCAB, DTP),           # (64, 64)
        "w_proj":  w_proj,                             # (128, 128)
        "b_proj":  b_proj,                             # (8, 128)
    }


if __name__ == "__main__":
    key = jax.random.PRNGKey(0)
    k_img, k_ids, k_params = jax.random.split(key, 3)

    images = jax.random.normal(k_img, (B, C, H, W), jnp.float32)          # NCHW
    input_ids = jax.random.randint(k_ids, (B, S), 0, VOCAB, jnp.int32)
    attention_mask = jnp.ones((B, S), jnp.int32).at[:, S - 2:].set(0)     # pad last 2

    params = init_params(k_params)

    forward = jax.jit(medical_vlm_forward)
    out = forward(images, input_ids, attention_mask, params)
    jax.block_until_ready(out)

    assert out["image_embeds"].shape == (B, E)
    assert out["text_embeds"].shape == (B, E)
    print("KERNEL_OK")
</pallas_src>

<mosaic_0001>
module attributes {stable_mosaic.version = 11 : i64} {
  func.func @_vlm_kernel(%arg0: memref<32x64xf32, #tpu.memory_space<vmem>>, %arg1: memref<2x8xi32, #tpu.memory_space<vmem>>, %arg2: memref<2x8xf32, #tpu.memory_space<vmem>>, %arg3: memref<64x64xf32, #tpu.memory_space<vmem>>, %arg4: memref<1x64xf32, #tpu.memory_space<vmem>>, %arg5: memref<64x64xf32, #tpu.memory_space<vmem>>, %arg6: memref<128x128xf32, #tpu.memory_space<vmem>>, %arg7: memref<8x128xf32, #tpu.memory_space<vmem>>, %arg8: memref<8x128xf32, #tpu.memory_space<vmem>>, %arg9: memref<8x128xf32, #tpu.memory_space<vmem>>) attributes {dimension_semantics = [], scalar_prefetch = 0 : i64, scratch_operands = 1 : i64, tpu.core_type = #tpu.core_type<tc>} {
    %c0 = arith.constant 0 : index
    %c0_0 = arith.constant 0 : index
    %0 = vector.load %arg0[%c0, %c0_0] : memref<32x64xf32, #tpu.memory_space<vmem>>, vector<32x64xf32>
    %c0_1 = arith.constant 0 : index
    %c0_2 = arith.constant 0 : index
    %1 = vector.load %arg3[%c0_1, %c0_2] : memref<64x64xf32, #tpu.memory_space<vmem>>, vector<64x64xf32>
    %cst = arith.constant dense<0.000000e+00> : vector<32x64xf32>
    %2 = tpu.matmul %0, %1, %cst {dimension_numbers = #tpu.dot_dimension_numbers<[1], [0], [0], [1], [0, 0, 1, 1], [], []>} : vector<32x64xf32>, vector<64x64xf32>, vector<32x64xf32> -> vector<32x64xf32>
    %c0_3 = arith.constant 0 : index
    %c0_4 = arith.constant 0 : index
    %3 = vector.load %arg4[%c0_3, %c0_4] : memref<1x64xf32, #tpu.memory_space<vmem>>, vector<1x64xf32>
    %4 = vector.broadcast %3 : vector<1x64xf32> to vector<32x64xf32>
    %5 = arith.addf %2, %4 : vector<32x64xf32>
    %6 = arith.mulf %5, %5 : vector<32x64xf32>
    %7 = arith.mulf %5, %6 : vector<32x64xf32>
    %cst_5 = arith.constant 4.471500e-02 : f32
    %8 = vector.broadcast %cst_5 : f32 to vector<32x64xf32>
    %9 = arith.mulf %8, %7 : vector<32x64xf32>
    %10 = arith.addf %5, %9 : vector<32x64xf32>
    %cst_6 = arith.constant 0.797884583 : f32
    %11 = vector.broadcast %cst_6 : f32 to vector<32x64xf32>
    %12 = arith.mulf %11, %10 : vector<32x64xf32>
    %13 = math.tanh %12 : vector<32x64xf32>
    %cst_7 = arith.constant 1.000000e+00 : f32
    %14 = vector.broadcast %cst_7 : f32 to vector<32x64xf32>
    %15 = arith.addf %14, %13 : vector<32x64xf32>
    %cst_8 = arith.constant 5.000000e-01 : f32
    %16 = vector.broadcast %cst_8 : f32 to vector<32x64xf32>
    %17 = arith.mulf %16, %15 : vector<32x64xf32>
    %18 = arith.mulf %5, %17 : vector<32x64xf32>
    %19 = vector.shape_cast %18 : vector<32x64xf32> to vector<2x16x64xf32>
    %cst_9 = arith.constant dense<0.000000e+00> : vector<2x64xf32>
    %20 = vector.multi_reduction <add>, %19, %cst_9 [1] : vector<2x16x64xf32> to vector<2x64xf32>
    %cst_10 = arith.constant 6.250000e-02 : f32
    %21 = vector.broadcast %cst_10 : f32 to vector<2x64xf32>
    %22 = arith.mulf %20, %21 : vector<2x64xf32>
    %c0_11 = arith.constant 0 : index
    %c0_12 = arith.constant 0 : index
    %23 = vector.load %arg1[%c0_11, %c0_12] : memref<2x8xi32, #tpu.memory_space<vmem>>, vector<2x8xi32>
    %c0_13 = arith.constant 0 : index
    %c0_14 = arith.constant 0 : index
    %24 = vector.load %arg2[%c0_13, %c0_14] : memref<2x8xf32, #tpu.memory_space<vmem>>, vector<2x8xf32>
    %25 = tpu.iota {dimensions = array<i32: 2>} : vector<2x8x64xi32>
    %26 = vector.shape_cast %23 : vector<2x8xi32> to vector<2x8x1xi32>
    %27 = vector.broadcast %26 : vector<2x8x1xi32> to vector<2x8x64xi32>
    %28 = arith.cmpi eq, %27, %25 : vector<2x8x64xi32>
    %29 = vector.shape_cast %24 : vector<2x8xf32> to vector<2x8x1xf32>
    %cst_15 = arith.constant 0.000000e+00 : f32
    %30 = vector.shape_cast %29 : vector<2x8x1xf32> to vector<2x8x1xf32>
    %31 = vector.broadcast %30 : vector<2x8x1xf32> to vector<2x8x64xf32>
    %32 = vector.broadcast %cst_15 : f32 to vector<2x8x64xf32>
    %33 = arith.select %28, %31, %32 : vector<2x8x64xi1>, vector<2x8x64xf32>
    %cst_16 = arith.constant dense<0.000000e+00> : vector<2x64xf32>
    %34 = vector.multi_reduction <add>, %33, %cst_16 [1] : vector<2x8x64xf32> to vector<2x64xf32>
    %cst_17 = arith.constant dense<0.000000e+00> : vector<2xf32>
    %35 = vector.multi_reduction <add>, %24, %cst_17 [1] : vector<2x8xf32> to vector<2xf32>
    %36 = vector.shape_cast %35 : vector<2xf32> to vector<2x1xf32>
    %cst_18 = arith.constant 9.99999997E-7 : f32
    %37 = vector.broadcast %cst_18 : f32 to vector<2x1xf32>
    %38 = arith.addf %36, %37 : vector<2x1xf32>
    %39 = tpu.reciprocal %38 {approx = true} : vector<2x1xf32> -> vector<2x1xf32>
    %c0_19 = arith.constant 0 : index
    %c0_20 = arith.constant 0 : index
    %40 = vector.load %arg5[%c0_19, %c0_20] : memref<64x64xf32, #tpu.memory_space<vmem>>, vector<64x64xf32>
    %cst_21 = arith.constant dense<0.000000e+00> : vector<2x64xf32>
    %41 = tpu.matmul %34, %40, %cst_21 {dimension_numbers = #tpu.dot_dimension_numbers<[1], [0], [0], [1], [0, 0, 1, 1], [], []>} : vector<2x64xf32>, vector<64x64xf32>, vector<2x64xf32> -> vector<2x64xf32>
    %42 = vector.broadcast %39 : vector<2x1xf32> to vector<2x64xf32>
    %43 = arith.mulf %41, %42 : vector<2x64xf32>
    %cst_22 = arith.constant 0.000000e+00 : f32
    %44 = vector.broadcast %cst_22 : f32 to vector<8x128xf32>
    %c0_23 = arith.constant 0 : index
    %c0_24 = arith.constant 0 : index
    %45 = vector.load %arg9[%c0_23, %c0_24] : memref<8x128xf32, #tpu.memory_space<vmem>>, vector<8x128xf32>
    tpu.vector_store %arg9[%c0_23, %c0_24], %44 {strides = array<i32>} : memref<8x128xf32, #tpu.memory_space<vmem>>, vector<8x128xf32>,
    %c0_25 = arith.constant 0 : index
    %c0_26 = arith.constant 0 : index
    %46 = vector.load %arg9[%c0_25, %c0_26] : memref<8x128xf32, #tpu.memory_space<vmem>>, vector<2x64xf32>
    tpu.vector_store %arg9[%c0_25, %c0_26], %22 {strides = array<i32>} : memref<8x128xf32, #tpu.memory_space<vmem>>, vector<2x64xf32>,
    %c2 = arith.constant 2 : index
    %c64 = arith.constant 64 : index
    %47 = vector.load %arg9[%c2, %c64] : memref<8x128xf32, #tpu.memory_space<vmem>>, vector<2x64xf32>
    tpu.vector_store %arg9[%c2, %c64], %43 {strides = array<i32>} : memref<8x128xf32, #tpu.memory_space<vmem>>, vector<2x64xf32>,
    %c0_27 = arith.constant 0 : index
    %c0_28 = arith.constant 0 : index
    %48 = vector.load %arg9[%c0_27, %c0_28] : memref<8x128xf32, #tpu.memory_space<vmem>>, vector<8x128xf32>
    %c0_29 = arith.constant 0 : index
    %c0_30 = arith.constant 0 : index
    %49 = vector.load %arg6[%c0_29, %c0_30] : memref<128x128xf32, #tpu.memory_space<vmem>>, vector<128x128xf32>
    %cst_31 = arith.constant dense<0.000000e+00> : vector<8x128xf32>
    %50 = tpu.matmul %48, %49, %cst_31 {dimension_numbers = #tpu.dot_dimension_numbers<[1], [0], [0], [1], [0, 0, 1, 1], [], []>} : vector<8x128xf32>, vector<128x128xf32>, vector<8x128xf32> -> vector<8x128xf32>
    %c0_32 = arith.constant 0 : index
    %c0_33 = arith.constant 0 : index
    %51 = vector.load %arg7[%c0_32, %c0_33] : memref<8x128xf32, #tpu.memory_space<vmem>>, vector<8x128xf32>
    %52 = arith.addf %50, %51 : vector<8x128xf32>
    %53 = arith.mulf %52, %52 : vector<8x128xf32>
    %cst_34 = arith.constant dense<0.000000e+00> : vector<8xf32>
    %54 = vector.multi_reduction <add>, %53, %cst_34 [1] : vector<8x128xf32> to vector<8xf32>
    %55 = vector.shape_cast %54 : vector<8xf32> to vector<8x1xf32>
    %cst_35 = arith.constant 9.99999996E-13 : f32
    %56 = vector.broadcast %cst_35 : f32 to vector<8x1xf32>
    %57 = arith.addf %55, %56 : vector<8x1xf32>
    %58 = math.rsqrt %57 : vector<8x1xf32>
    %59 = vector.broadcast %58 : vector<8x1xf32> to vector<8x128xf32>
    %60 = arith.mulf %52, %59 : vector<8x128xf32>
    %c0_36 = arith.constant 0 : index
    %c0_37 = arith.constant 0 : index
    %61 = vector.load %arg8[%c0_36, %c0_37] : memref<8x128xf32, #tpu.memory_space<vmem>>, vector<8x128xf32>
    tpu.vector_store %arg8[%c0_36, %c0_37], %60 {strides = array<i32>} : memref<8x128xf32, #tpu.memory_space<vmem>>, vector<8x128xf32>,
    return
  }
}

</mosaic_0001>

<bundles_post_ra>
// kernel: medical_vlm_forward.1
= control target key start
LH: loop header
LB: loop body
LE: loop exit
PB: predicated region body
PF: predicated region fallthrough
CT: control target
= control target key end

     0   :  { %v145_v0 = vlaneseq  ;;  %vm193_vm0 = vcmask 58368   ;;  %vm45_vm1 = vcmask 523264   ;;  %vm209_vm4 = vcmask 1041409   ;;  %s541_s2 = inlined_call_operand.vmem [shape: f32[2,8], index: 2, kind: input, shape index: {}]   ;;  %s542_s1 = inlined_call_operand.vmem [shape: s32[2,8], index: 1, kind: input, shape index: {}]   ;;  %s543_s5 = inlined_call_operand.vmem [shape: f32[64,64], index: 5, kind: input, shape index: {}]   ;;  %s544_s3 = inlined_call_operand.vmem [shape: f32[64,64], index: 3, kind: input, shape index: {}]   ;;  %s545_s0 = inlined_call_operand.vmem [shape: f32[32,64], index: 0, kind: input, shape index: {}]   ;;  %s546_s4 = inlined_call_operand.vmem [shape: f32[1,64], index: 4, kind: input, shape index: {}]   ;;  %s547_s6 = inlined_call_operand.vmem [shape: f32[128,128], index: 6, kind: input, shape index: {}]   ;;  %s548_s7 = inlined_call_operand.vmem [shape: f32[8,128], index: 7, kind: input, shape index: {}]   ;;  %s549_s8 = inlined_call_operand.vmem [shape: f32[8,128], index: 8, kind: output, shape index: {}]  }
   0x1   :  { %v144_v2 = vld [vmem:[%s541_s2] sm:$0x3]  ;;  %v206_v8 = vld [vmem:[%s543_s5 + $0x38] sm:$0xff]  ;;  %v205_v10 = vld [vmem:[%s543_s5 + $0x30] sm:$0xff]  ;;  %vm239_vm5 = vcmask 517120   ;;  %vm245_vm6 = vcmask 1041920  }
   0x2   :  { %v149_v1 = vshrl.u32 %v145_v0, 7  ;;  %v143_v3 = vld [vmem:[%s542_s1] sm:$0x3]  ;;  %v163_v4 = vperm.slane %v144_v2, 0  ;;  %v170_v7 = vperm.slane %v144_v2, 1  ;;  %221 = vmatpush.msra.mxu1 %v206_v8  ;;  %v40_v9 = vld [vmem:[%s544_s3 + $0x38] sm:$0xff] }
   0x3   :  { %v147_v5 = vperm.slane %v143_v3, 0  ;;  %v154_v6 = vperm.slane %v143_v3, 1  ;;  %310 = vmatpush.msra.mxu3 %v40_v9  ;;  %66 = vmatpush.msra.mxu0 %v40_v9  ;;  %v39_v11 = vld [vmem:[%s544_s3 + $0x30] sm:$0xff]  ;;  %v204_v12 = vld [vmem:[%s543_s5 + $0x28] sm:$0xff]  ;;  %v203_v14 = vld [vmem:[%s543_s5 + $0x20] sm:$0xff]  ;;  %v194_v24 = vsel %vm193_vm0, %v144_v2, 0.0 }
   0x4   :  { %321 = vset.pattern.permute.xlu1 %v149_v1  ;;  %320 = vset.pattern.permute.xlu0 %v149_v1  ;;  %v38_v13 = vld [vmem:[%s544_s3 + $0x28] sm:$0xff]  ;;  %v37_v15 = vld [vmem:[%s544_s3 + $0x20] sm:$0xff]  ;;  %v202_v16 = vld [vmem:[%s543_s5 + $0x18] sm:$0xff]  ;;  %v146_v27 = vand.u32 127, %v145_v0 }
   0x5   :  { %222 = vmatpush.msra.mxu1 %v205_v10  ;;  %311 = vmatpush.msra.mxu3 %v39_v11  ;;  %v36_v17 = vld [vmem:[%s544_s3 + $0x18] sm:$0xff]  ;;  %v201_v18 = vld [vmem:[%s543_s5 + $0x10] sm:$0xff]  ;;  %v200_v20 = vld [vmem:[%s543_s5 + $0x8] sm:$0xff]  ;;  %v335_v10 = vmov 0.0  }
   0x6   :  { %67 = vmatpush.msra.mxu0 %v39_v11  ;;  %v35_v19 = vld [vmem:[%s544_s3 + $0x10] sm:$0xff]  ;;  %v34_v21 = vld [vmem:[%s544_s3 + $0x8] sm:$0xff]  ;;  %v199_v22 = vld [vmem:[%s543_s5] sm:$0xff]  ;;  %195 = vadd.xlane.f32.xlu2 %v194_v24  ;;  %234 = vst [vmem:[#allocation2] sm:$0xff] %v335_v10 }
   0x7   :  { %223 = vmatpush.msra.mxu1 %v204_v12  ;;  %312 = vmatpush.msra.mxu3 %v38_v13  ;;  %v33_v23 = vld [vmem:[%s544_s3] sm:$0xff]  ;;  %v31_v25 = vld [vmem:[%s545_s0 + $0x10] sm:$0xff]  ;;  %v32_v28 = vld [vmem:[%s545_s0 + $0x18] sm:$0xff]  ;;  %s336_s3 = smov 64  }
   0x8   :  { %68 = vmatpush.msra.mxu0 %v38_v13  ;;  %v29_v26 = vld [vmem:[%s545_s0] sm:$0xff]  ;;  %v30_v31 = vld [vmem:[%s545_s0 + $0x8] sm:$0xff]  ;;  %v263_v8 = vld [vmem:[%s547_s6 + $0x78] sm:$0xff] }
   0x9   :  { %224 = vmatpush.msra.mxu1 %v203_v14  ;;  %313 = vmatpush.msra.mxu3 %v37_v15  ;;  %v322_v51 = vld [vmem:[%s546_s4] ss:$0 sm:$0xff]  ;;  %v262_v9 = vld [vmem:[%s547_s6 + $0x70] sm:$0xff]  ;;  %v261_v14 = vld [vmem:[%s547_s6 + $0x68] sm:$0xff] }
   0xa   :  { %69 = vmatpush.msra.mxu0 %v37_v15  ;;  %265 = vmatpush.msra.mxu2 %v263_v8  ;;  %v250_v8 = vld [vmem:[%s547_s6 + $0x10] sm:$0xff]  ;;  %v248_v10 = vld [vmem:[%s547_s6] sm:$0xff] }
   0xb   :  { %225 = vmatpush.msra.mxu1 %v202_v16  ;;  %314 = vmatpush.msra.mxu3 %v36_v17 }
   0xc   :  { %168 = vperm.xlu1 %321, %v163_v4   ;;  %152 = vperm.xlu0 %320, %v147_v5  }
   0xd   :  { %70 = vmatpush.msra.mxu0 %v36_v17  ;;  %226 = vmatpush.msra.mxu1 %v201_v18  ;;  %v260_v18 = vld [vmem:[%s547_s6 + $0x60] sm:$0xff] }
   0xe   :  { %315 = vmatpush.msra.mxu3 %v35_v19  ;;  %266 = vmatpush.msra.mxu2 %v262_v9  ;;  %v249_v9 = vld [vmem:[%s547_s6 + $0x8] sm:$0xff] }
   0xf   :  { %71 = vmatpush.msra.mxu0 %v35_v19  ;;  %227 = vmatpush.msra.mxu1 %v200_v20 }
  0x10   :  { %316 = vmatpush.msra.mxu3 %v34_v21  ;;  %267 = vmatpush.msra.mxu2 %v261_v14 }
  0x11   :  { %72 = vmatpush.msra.mxu0 %v34_v21  ;;  %228 = vmatpush.msra.mxu1 %v199_v22  ;;  %v259_v21 = vld [vmem:[%s547_s6 + $0x58] sm:$0xff] }
  0x12   :  { %317 = vmatpush.msra.mxu3 %v33_v23  ;;  %268 = vmatpush.msra.mxu2 %v260_v18 }
  0x13   :  { %73 = vmatpush.msra.mxu0 %v33_v23  ;;  %307 = vmatmul.msk.f32.vlgmr.msra.gmra.mxu3 %vm45_vm1, %v31_v25  ;;  %v258_v25 = vld [vmem:[%s547_s6 + $0x50] sm:$0xff] }
  0x14   :  { %175 = vperm.xlu1 %321, %v170_v7   ;;  %159 = vperm.xlu0 %320, %v154_v6  }
  0x15   :  { %305 = vmatmul.msk.f32.vlgmr.msra.gmra.mxu0 %vm45_vm1, %v29_v26  ;;  %269 = vmatpush.msra.mxu2 %v259_v21 }
  0x17   :  { %270 = vmatpush.msra.mxu2 %v258_v25 }
  0x1b   :  { %308 = vmatmul.msk.f32.gmra.mxu3 %vm45_vm1, %v32_v28  ;;  %v257_v28 = vld [vmem:[%s547_s6 + $0x48] sm:$0xff] }
  0x1c   :  { %271 = vmatpush.msra.mxu2 %v257_v28 }
  0x1d   :  { %306 = vmatmul.msk.f32.gmra.mxu0 %vm45_vm1, %v30_v31  ;;  %v256_v31 = vld [vmem:[%s547_s6 + $0x40] sm:$0xff] }
  0x1e   :  { %272 = vmatpush.msra.mxu2 %v256_v31 }
  0x79   :  { %v196_v4 = vpop.xlane.xlu2 %195 }
  0x7a   :  { %v197_v15 = vadd.f32 1e-06, %v196_v4 }
  0x7e   :  { %v169_v29 = vpop.permute.xlu1 %168  ;;  %v153_v30 = vpop.permute.xlu0 %152 }
  0x7f   :  { %vm161_vm2 = vcmp.eq.s32.totalorder %v153_v30, %v146_v27 }
  0x80   :  { %v177_v32 = vsel %vm161_vm2, %v169_v29, 0.0 }
  0x81   :  { %v179_v33 = vsel %vm45_vm1, %v177_v32, 0.0 }
  0x82   :  { %v180_v34 = vrot.slane %v179_v33, 4 }
  0x84   :  { %v181_v35 = vadd.f32 %v180_v34, %v179_v33  ;;  %v255_v34 = vld [vmem:[%s547_s6 + $0x38] sm:$0xff] }
  0x85   :  { %273 = vmatpush.msra.mxu2 %v255_v34 }
  0x86   :  { %v176_v36 = vpop.permute.xlu1 %175  ;;  %v160_v37 = vpop.permute.xlu0 %159  ;;  %v182_v38 = vrot.slane %v181_v35, 2 }
  0x87   :  { %vm162_vm3 = vcmp.eq.s32.totalorder %v160_v37, %v146_v27 }
  0x88   :  { %v178_v39 = vsel %vm162_vm3, %v176_v36, 0.0  ;;  %v183_v42 = vadd.f32 %v182_v38, %v181_v35 }
  0x89   :  { %v186_v40 = vsel %vm45_vm1, %v178_v39, 0.0  ;;  %v254_v39 = vld [vmem:[%s547_s6 + $0x30] sm:$0xff] }
  0x8a   :  { %v187_v41 = vrot.slane %v186_v40, 4  ;;  %v184_v45 = vrot.slane %v183_v42, 1  ;;  %274 = vmatpush.msra.mxu2 %v254_v39 }
  0x8c   :  { %v188_v43 = vadd.f32 %v187_v41, %v186_v40  ;;  %v185_v48 = vadd.f32 %v184_v45, %v183_v42 }
  0x8e   :  { %v189_v44 = vrot.slane %v188_v43, 2 }
  0x90   :  { %v190_v46 = vadd.f32 %v189_v44, %v188_v43  ;;  %v253_v43 = vld [vmem:[%s547_s6 + $0x28] sm:$0xff] }
  0x91   :  { %275 = vmatpush.msra.mxu2 %v253_v43 }
  0x92   :  { %v191_v47 = vrot.slane %v190_v46, 1  ;;  %v75_v52 = vpop.f32.mrf.mxu0 }
  0x93   :  { %v76_v53 = vadd.f32 %v322_v51, %v75_v52 }
  0x94   :  { %v192_v49 = vadd.f32 %v191_v47, %v190_v46 }
  0x95   :  { %v87_v54 = vmul.f32 %v76_v53, %v76_v53 }
  0x96   :  { %v210_v50 = vsel %vm209_vm4, %v192_v49, %v185_v48  ;;  %v81_v55 = vpop.f32.mrf.mxu3  ;;  %v252_v48 = vld [vmem:[%s547_s6 + $0x20] sm:$0xff] }
  0x97   :  { %309 = vmatmul.msk.f32.vlgmr.msra.gmra.mxu1 %vm45_vm1, %v210_v50  ;;  %v461_v56 = vadd.f32 %v322_v51, %v81_v55  ;;  %v91_v57 = vmul.f32 %v87_v54, %v76_v53  ;;  %276 = vmatpush.msra.mxu2 %v252_v48 }
  0x99   :  { %v89_v58 = vmul.f32 %v461_v56, %v461_v56  ;;  %v95_v59 = vmul.f32 0.044715, %v91_v57 }
  0x9a   :  { %v78_v60 = vpop.f32.mrf.mxu0 }
  0x9b   :  { %v93_v61 = vmul.f32 %v89_v58, %v461_v56  ;;  %v466_v62 = vadd.f32 %v322_v51, %v78_v60  ;;  %v99_v63 = vadd.f32 %v95_v59, %v76_v53 }
  0x9d   :  { %v97_v0 = vmul.f32 0.044715, %v93_v61  ;;  %v88_v1 = vmul.f32 %v466_v62, %v466_v62  ;;  %v103_v2 = vmul.f32 0.7978846, %v99_v63 }
  0x9e   :  { %v84_v3 = vpop.f32.mrf.mxu3 }
  0x9f   :  { %v101_v5 = vadd.f32 %v97_v0, %v461_v56  ;;  %v92_v6 = vmul.f32 %v88_v1, %v466_v62  ;;  %v472_v7 = vadd.f32 %v322_v51, %v84_v3  ;;  %323 = vtanh.f32 %v103_v2 }
  0xa1   :  { %v105_v11 = vmul.f32 0.7978846, %v101_v5  ;;  %v96_v12 = vmul.f32 0.044715, %v92_v6  ;;  %v90_v13 = vmul.f32 %v472_v7, %v472_v7 }
  0xa3   :  { %325 = vtanh.f32 %v105_v11  ;;  %v100_v16 = vadd.f32 %v96_v12, %v466_v62  ;;  %v94_v17 = vmul.f32 %v90_v13, %v472_v7  ;;  %v264_v13 = vld [vmem:[%s548_s7] sm:$0xff] }
  0xa4   :  { %327 = vrcp.f32 %v197_v15 }
  0xa5   :  { %v104_v19 = vmul.f32 0.7978846, %v100_v16  ;;  %v98_v20 = vmul.f32 0.044715, %v94_v17  ;;  %v324_v22 = vpop.eup %323 }
  0xa6   :  { %v111_v23 = vadd.f32 1.0, %v324_v22 }
  0xa7   :  { %329 = vtanh.f32 %v104_v19  ;;  %v102_v24 = vadd.f32 %v98_v20, %v472_v7 }
  0xa8   :  { %v115_v29 = vmul.f32 0.5, %v111_v23 }
  0xa9   :  { %v326_v26 = vpop.eup %325  ;;  %v106_v27 = vmul.f32 0.7978846, %v102_v24 }
  0xaa   :  { %v113_v30 = vadd.f32 1.0, %v326_v26  ;;  %v328_v32 = vpop.eup %327  ;;  %v119_v35 = vmul.f32 %v115_v29, %v76_v53 }
  0xab   :  { %331 = vtanh.f32 %v106_v27 }
  0xac   :  { %v117_v36 = vmul.f32 0.5, %v113_v30  ;;  %v123_v44 = vsel %vm45_vm1, %v119_v35, 0.0 }
  0xad   :  { %v330_v33 = vpop.eup %329 }
  0xae   :  { %v112_v37 = vadd.f32 1.0, %v330_v33  ;;  %v121_v45 = vmul.f32 %v117_v36, %v461_v56 }
  0xb0   :  { %v116_v41 = vmul.f32 0.5, %v112_v37  ;;  %v132_v52 = vsel %vm45_vm1, %v121_v45, 0.0 }
  0xb1   :  { %v332_v42 = vpop.eup %331 }
  0xb2   :  { %v120_v46 = vmul.f32 %v116_v41, %v466_v62  ;;  %v114_v47 = vadd.f32 1.0, %v332_v42 }
  0xb4   :  { %v124_v49 = vsel %vm45_vm1, %v120_v46, 0.0  ;;  %v118_v50 = vmul.f32 0.5, %v114_v47 }
  0xb5   :  { %v125_v51 = vadd.f32 %v124_v49, %v123_v44 }
  0xb6   :  { %v122_v53 = vmul.f32 %v118_v50, %v472_v7  ;;  %v251_v7 = vld [vmem:[%s547_s6 + $0x18] sm:$0xff] }
  0xb7   :  { %v126_v54 = vrot.slane %v125_v51, 4  ;;  %277 = vmatpush.msra.mxu2 %v251_v7 }
  0xb8   :  { %v133_v55 = vsel %vm45_vm1, %v122_v53, 0.0 }
  0xb9   :  { %v127_v56 = vadd.f32 %v126_v54, %v125_v51  ;;  %v134_v57 = vadd.f32 %v133_v55, %v132_v52  ;;  %278 = vmatpush.msra.mxu2 %v250_v8 }
  0xbb   :  { %v135_v58 = vrot.slane %v134_v57, 4  ;;  %v128_v59 = vrot.slane %v127_v56, 2  ;;  %279 = vmatpush.msra.mxu2 %v249_v9 }
  0xbd   :  { %v136_v60 = vadd.f32 %v135_v58, %v134_v57  ;;  %v129_v62 = vadd.f32 %v128_v59, %v127_v56  ;;  %280 = vmatpush.msra.mxu2 %v248_v10 }
  0xbf   :  { %v137_v61 = vrot.slane %v136_v60, 2  ;;  %v130_v0 = vrot.slane %v129_v62, 1 }
  0xc1   :  { %v138_v63 = vadd.f32 %v137_v61, %v136_v60  ;;  %v131_v2 = vadd.f32 %v130_v0, %v129_v62 }
  0xc3   :  { %v139_v1 = vrot.slane %v138_v63, 1  ;;  %v141_v4 = vmul.f32 0.0625, %v131_v2 }
  0xc5   :  { %v140_v3 = vadd.f32 %v139_v1, %v138_v63 }
  0xc7   :  { %v142_v5 = vmul.f32 0.0625, %v140_v3 }
  0xc9   :  { %v237_v6 = vsel %vm209_vm4, %v142_v5, %v141_v4 }
  0xca   :  { %240 = vst.msk [vmem:[#allocation2] sm:$0x3] %vm239_vm5, %v237_v6 }
 0x114   :  { %v230_v38 = vpop.f32.mrf.mxu1 }
 0x115   :  { %v233_v40 = vmul.f32 %v328_v32, %v230_v38 }
 0x117   :  { %242 = vrot.lane.b32.xlu2 %v233_v40, %s336_s3 }
 0x171   :  { %v243_v11 = vpop.permute.xlu2 %242 }
 0x172   :  { %246 = vst.msk [vmem:[#allocation2 + $0x2] sm:$0x3] %vm245_vm6, %v243_v11 }
 0x179   :  { %v247_v12 = vld [vmem:[#allocation2] sm:$0xff] }
 0x17a   :  { %281 = vmatmul.f32.vlgmr.msra.gmra.mxu2 %v247_v12 }
 0x1fd   :  { %v282_v14 = vpop.f32.mrf.mxu2 }
 0x1fe   :  { %v283_v15 = vadd.f32 %v282_v14, %v264_v13 }
 0x200   :  { %v285_v16 = vmul.f32 %v283_v15, %v283_v15 }
 0x202   :  { %286 = vadd.xlane.f32.xlu0 %v285_v16 }
 0x275   :  { %v287_v17 = vpop.xlane.xlu0 %286 }
 0x276   :  { %v288_v18 = vadd.f32 1e-12, %v287_v17 }
 0x278   :  { %333 = vrsqrt.f32 %v288_v18  ;;  %vm295_vm8 = vweird.f32 %v288_v18 }
 0x27e   :  { %v334_v19 = vpop.eup %333 }
 0x27f   :  { %v290_v20 = vmul.f32 %v334_v19, %v288_v18  ;;  %vm296_vm7 = vweird.f32 %v334_v19 }
 0x280   :  { %vm297_vm9 = vmor %vm295_vm8, %vm296_vm7 }
 0x281   :  { %v291_v21 = vmul.f32 %v334_v19, %v290_v20 }
 0x283   :  { %v292_v22 = vmul.f32 0.5, %v291_v21 }
 0x285   :  { %v293_v23 = vsub.f32 1.5, %v292_v22 }
 0x287   :  { %v294_v24 = vmul.f32 %v334_v19, %v293_v23 }
 0x289   :  { %v298_v25 = vsel %vm297_vm9, %v334_v19, %v294_v24 }
 0x28a   :  { %v299_v26 = vmul.f32 %v298_v25, %v283_v15 }
 0x28c   :  { %300 = vst [vmem:[%s549_s8] sm:$0xff] %v299_v26 }

</bundles_post_ra>
